<compile_context>
chip_gen: v5e
topology: v5e:2x2
jax: 0.10.0
libtpu: 0.0.40
codegen_flags: <defaults>
</compile_context>

<pallas_src>
import functools

import numpy as np
import jax
import jax.numpy as jnp
from jax.experimental import pallas as pl
from jax.experimental.pallas import tpu as pltpu


# ----------------------------- 1x1 conv kernels (M-tiled) -----------------------------

def _scale_relu_matmul_kernel(x_ref, s_ref, b_ref, w_ref, o_ref):
    # fused pre-activation + 1x1 conv:  relu(x * scale + bias) @ w
    a = jnp.maximum(x_ref[...] * s_ref[...] + b_ref[...], 0.0)
    o_ref[...] = jnp.dot(a.astype(w_ref.dtype), w_ref[...],
                         preferred_element_type=jnp.float32).astype(o_ref.dtype)


def _scale_relu_matmul_add_kernel(x_ref, s_ref, b_ref, w_ref, r_ref, o_ref):
    # fused pre-activation + 1x1 conv + residual add
    a = jnp.maximum(x_ref[...] * s_ref[...] + b_ref[...], 0.0)
    o_ref[...] = (jnp.dot(a.astype(w_ref.dtype), w_ref[...],
                          preferred_element_type=jnp.float32)
                  + r_ref[...].astype(jnp.float32)).astype(o_ref.dtype)


def scale_relu_matmul(x, scale, bias, w, res=None, *, tm=512):
    """relu(x*scale+bias) @ w (+ res), tiled over the M (=N*H*W) dimension."""
    M, K = x.shape
    Cout = w.shape[1]
    tm = M if M <= tm else tm                      # tm==M (full) or 512 (mult. of 8)
    grid = (pl.cdiv(M, tm),)

    in_specs = [
        pl.BlockSpec((tm, K), lambda i: (i, 0)),
        pl.BlockSpec((1, K), lambda i: (0, 0)),
        pl.BlockSpec((1, K), lambda i: (0, 0)),
        pl.BlockSpec((K, Cout), lambda i: (0, 0)),
    ]
    args = [x, scale, bias, w]
    if res is not None:
        in_specs.append(pl.BlockSpec((tm, Cout), lambda i: (i, 0)))
        args.append(res)
        kernel = _scale_relu_matmul_add_kernel
    else:
        kernel = _scale_relu_matmul_kernel

    return pl.pallas_call(
        kernel,
        out_shape=jax.ShapeDtypeStruct((M, Cout), x.dtype),
        grid=grid,
        in_specs=in_specs,
        out_specs=pl.BlockSpec((tm, Cout), lambda i: (i, 0)),
        compiler_params=pltpu.CompilerParams(dimension_semantics=("parallel",)),
    )(*args)


def shortcut_strided_matmul(x_packed, scale_p, bias_p, w_packed, stride):
    """Strided 1x1 shortcut conv on relu(bn1(x)).

    x_packed is (N, H, Wo, stride*Cin) with adjacent column pairs packed on the
    lane axis (a free reshape).  The row subsample is done by the index_map
    (reads only rows 0, stride, 2*stride, ...); the column subsample is folded
    into w_packed = [wsc ; 0], so no glue gather pass is needed.
    """
    N, H, Wo, Kp = x_packed.shape
    Ho = H // stride
    Cout = w_packed.shape[1]
    return pl.pallas_call(
        _scale_relu_matmul_kernel,
        out_shape=jax.ShapeDtypeStruct((N, Ho, Wo, Cout), x_packed.dtype),
        grid=(N, Ho),
        in_specs=[
            pl.BlockSpec((None, None, Wo, Kp), lambda n, i: (n, stride * i, 0, 0)),
            pl.BlockSpec((1, Kp), lambda n, i: (0, 0)),
            pl.BlockSpec((1, Kp), lambda n, i: (0, 0)),
            pl.BlockSpec((Kp, Cout), lambda n, i: (0, 0)),
        ],
        out_specs=pl.BlockSpec((None, None, Wo, Cout), lambda n, i: (n, i, 0, 0)),
        compiler_params=pltpu.CompilerParams(
            dimension_semantics=("parallel", "parallel")),
    )(x_packed, scale_p, bias_p, w_packed)


# ----------------------------- fused bn2+relu+pad+3x3 conv -----------------------------

def _bn_relu_conv3x3_s1_kernel(x_ref, s_ref, b_ref, w_ref, o_ref, pad_ref, acc_ref,
                               *, H, W):
    # x_ref: (H, W, Cin) raw conv1 output for one image; pad_ref: (H+2, W+2, Cin)
    # scratch; acc_ref: (H*W, Cout) f32 scratch.  Activation is applied BEFORE
    # padding so the border stays exactly zero.
    Cout = o_ref.shape[-1]
    pad_ref[...] = jnp.zeros_like(pad_ref)
    act = jnp.maximum(x_ref[...] * s_ref[...].reshape(1, 1, -1)
                      + b_ref[...].reshape(1, 1, -1), 0.0)
    pad_ref[pl.ds(1, H), pl.ds(1, W), :] = act.astype(pad_ref.dtype)

    acc_ref[...] = jnp.zeros_like(acc_ref)
    for kh in range(3):
        for kw in range(3):
            patch = pad_ref[pl.ds(kh, H), pl.ds(kw, W), :]
            acc_ref[...] += jnp.dot(patch.reshape(H * W, -1), w_ref[kh, kw],
                                    preferred_element_type=jnp.float32)
    o_ref[...] = acc_ref[...].reshape(H, W, Cout).astype(o_ref.dtype)


def _bn_relu_conv3x3_s2_kernel(x_ref, s_ref, b_ref, w_ref, o_ref, ps_ref, acc_ref,
                               *, H, Ho, Wo):
    # Stride-2 path.  x_ref: (H, Wo, 2*Cin) with adjacent column pairs packed on
    # lanes; w_ref: (3, 2, 2*Cin, Cout) packed taps; ps_ref: (H+2, Wo+1, 2*Cin)
    # zero-padded activated scratch; acc_ref: (Ho*Wo, Cout) f32.
    Cout = o_ref.shape[-1]
    ps_ref[...] = jnp.zeros_like(ps_ref)
    act = jnp.maximum(x_ref[...] * s_ref[...].reshape(1, 1, -1)
                      + b_ref[...].reshape(1, 1, -1), 0.0)
    ps_ref[pl.ds(1, H), pl.ds(1, Wo), :] = act.astype(ps_ref.dtype)

    acc_ref[...] = jnp.zeros_like(acc_ref)
    for kh in range(3):
        rows = ps_ref[pl.ds(kh, 2 * Ho), :, :]               # (2*Ho, Wo+1, 2Cin)
        rows = rows.reshape(Ho, 2, Wo + 1, -1)[:, 0]         # rows kh, kh+2, ...
        left = rows[:, 0:Wo, :].reshape(Ho * Wo, -1)         # pairs (2j-2, 2j-1)
        right = rows[:, 1:Wo + 1, :].reshape(Ho * Wo, -1)    # pairs (2j,   2j+1)
        acc_ref[...] += jnp.dot(left, w_ref[kh, 0], preferred_element_type=jnp.float32)
        acc_ref[...] += jnp.dot(right, w_ref[kh, 1], preferred_element_type=jnp.float32)
    o_ref[...] = acc_ref[...].reshape(Ho, Wo, Cout).astype(o_ref.dtype)


def bn_relu_conv3x3(o1, scale, bias, w_hwio, stride, mm_dtype):
    """conv2(relu(bn2(o1))) with 3x3 kernel, padding 1, stride 1 or 2."""
    N, H, W, Cin = o1.shape
    Cout = w_hwio.shape[-1]

    if stride == 1:
        Ho, Wo = H, W
        x_arg = o1
        s_arg, b_arg = scale, bias
        w_arg = w_hwio.astype(mm_dtype)
        kernel = functools.partial(_bn_relu_conv3x3_s1_kernel, H=H, W=W)
        pad_shape = (H + 2, W + 2, Cin)
        acc_rows = H * W
    else:  # stride == 2, H and W even (packed column-pair formulation)
        Ho, Wo = H // 2, W // 2
        x_arg = o1.reshape(N, H, Wo, 2 * Cin)                 # free reshape
        s_arg = jnp.concatenate([scale, scale], axis=-1)
        b_arg = jnp.concatenate([bias, bias], axis=-1)
        # tap kw=0 hits the odd half of the *left* pair; kw=1/kw=2 hit the right pair.
        w_lo = jnp.concatenate([jnp.zeros_like(w_hwio[:, 0]), w_hwio[:, 0]], axis=1)
        w_hi = jnp.concatenate([w_hwio[:, 1], w_hwio[:, 2]], axis=1)
        w_arg = jnp.stack([w_lo, w_hi], axis=1).astype(mm_dtype)   # (3,2,2Cin,Cout)
        kernel = functools.partial(_bn_relu_conv3x3_s2_kernel, H=H, Ho=Ho, Wo=Wo)
        pad_shape = (H + 2, Wo + 1, 2 * Cin)
        acc_rows = Ho * Wo

    _, Hx, Wx, Kc = x_arg.shape
    return pl.pallas_call(
        kernel,
        out_shape=jax.ShapeDtypeStruct((N, Ho, Wo, Cout), o1.dtype),
        grid=(N,),
        in_specs=[
            pl.BlockSpec((None, Hx, Wx, Kc), lambda n: (n, 0, 0, 0)),
            pl.BlockSpec((1, Kc), lambda n: (0, 0)),
            pl.BlockSpec((1, Kc), lambda n: (0, 0)),
            pl.BlockSpec(w_arg.shape, lambda n: (0, 0, 0, 0)),
        ],
        out_specs=pl.BlockSpec((None, Ho, Wo, Cout), lambda n: (n, 0, 0, 0)),
        scratch_shapes=[
            pltpu.VMEM(pad_shape, mm_dtype),          # padded activation
            pltpu.VMEM((acc_rows, Cout), jnp.float32),  # accumulator
        ],
        compiler_params=pltpu.CompilerParams(dimension_semantics=("parallel",)),
    )(x_arg, s_arg, b_arg, w_arg)


# ----------------------------- module forward -----------------------------

def _bn_fold(x_nhwc, gamma, beta, eps=1e-5):
    # Single-pass sum / sum-of-squares (biased variance == PyTorch BN normalization).
    # TODO(synk): could be folded into the producing kernel's epilogue.
    n = x_nhwc.shape[0] * x_nhwc.shape[1] * x_nhwc.shape[2]
    s = jnp.sum(x_nhwc, axis=(0, 1, 2))
    ss = jnp.sum(x_nhwc * x_nhwc, axis=(0, 1, 2))
    mean = s / n
    var = jnp.maximum(ss / n - mean * mean, 0.0)
    scale = gamma * jax.lax.rsqrt(var + eps)
    bias = beta - mean * scale
    return scale.reshape(1, -1), bias.reshape(1, -1)


def preact_bottleneck_forward(x_nchw, params, *, stride=1, enable_batchnorm=True,
                              eps=1e-5, mm_dtype=jnp.bfloat16):
    x = jnp.transpose(x_nchw, (0, 2, 3, 1)).astype(jnp.float32)  # -> NHWC
    N, H, W, Cin = x.shape
    planes = params["w1"].shape[1]
    Cout = params["w3"].shape[1]

    if enable_batchnorm:
        s1, b1 = _bn_fold(x, params["bn1_g"], params["bn1_b"], eps)
    else:
        s1 = jnp.ones((1, Cin), jnp.float32)
        b1 = jnp.zeros((1, Cin), jnp.float32)

    w1 = params["w1"].astype(mm_dtype)
    w3 = params["w3"].astype(mm_dtype)

    # conv1 (1x1) fused with the bn1+relu pre-activation, M-tiled
    o1 = scale_relu_matmul(x.reshape(-1, Cin), s1, b1, w1).reshape(N, H, W, planes)

    Ho = (H - 1) // stride + 1
    Wo = (W - 1) // stride + 1
    packed_ok = (stride == 2 and H % 2 == 0 and W % 2 == 0)

    # shortcut branch
    if "wsc" in params:
        wsc = params["wsc"].astype(mm_dtype)
        if stride == 1:
            shortcut = scale_relu_matmul(x.reshape(-1, Cin), s1, b1,
                                         wsc).reshape(N, Ho, Wo, Cout)
        elif packed_ok:
            x_packed = x.reshape(N, H, Wo, 2 * Cin)           # free reshape
            s1p = jnp.concatenate([s1, s1], axis=-1)
            b1p = jnp.concatenate([b1, b1], axis=-1)
            wsc_p = jnp.concatenate([wsc, jnp.zeros_like(wsc)], axis=0)
            shortcut = shortcut_strided_matmul(x_packed, s1p, b1p, wsc_p, stride)
        else:
            # TODO(synk): general/odd-shape strides fall back to a glue subsample.
            x_sub = x[:, ::stride, ::stride, :]
            shortcut = scale_relu_matmul(x_sub.reshape(-1, Cin), s1, b1,
                                         wsc).reshape(N, Ho, Wo, Cout)
    else:
        shortcut = x  # identity shortcut uses the raw (unactivated) input

    # bn2 + relu + pad + conv2 (3x3, stride) fused in one kernel
    if enable_batchnorm:
        s2, b2 = _bn_fold(o1, params["bn2_g"], params["bn2_b"], eps)
    else:
        s2 = jnp.ones((1, planes), jnp.float32)
        b2 = jnp.zeros((1, planes), jnp.float32)

    if stride == 1 or packed_ok:
        o2 = bn_relu_conv3x3(o1, s2, b2, params["w2"], stride, mm_dtype)
    else:
        # TODO(synk): general strides fall back to stride-1 conv + glue subsample.
        o2 = bn_relu_conv3x3(o1, s2, b2, params["w2"], 1,
                             mm_dtype)[:, ::stride, ::stride, :]

    # bn3 + relu + conv3 (1x1) + residual add fused, M-tiled
    if enable_batchnorm:
        s3, b3 = _bn_fold(o2, params["bn3_g"], params["bn3_b"], eps)
    else:
        s3 = jnp.ones((1, planes), jnp.float32)
        b3 = jnp.zeros((1, planes), jnp.float32)

    o3 = scale_relu_matmul(o2.reshape(-1, planes), s3, b3, w3,
                           res=shortcut.reshape(-1, Cout)).reshape(N, Ho, Wo, Cout)

    return jnp.transpose(o3, (0, 3, 1, 2))  # back to NCHW


# ----------------------------- params / reference -----------------------------

def init_params(key, in_planes, planes, stride, expansion=4):
    Cout = expansion * planes
    ks = jax.random.split(key, 9)
    w1_oihw = 0.1 * jax.random.normal(ks[0], (planes, in_planes, 1, 1), jnp.float32)
    w2_oihw = 0.1 * jax.random.normal(ks[1], (planes, planes, 3, 3), jnp.float32)
    w3_oihw = 0.1 * jax.random.normal(ks[2], (Cout, planes, 1, 1), jnp.float32)
    params = {
        "w1": w1_oihw[:, :, 0, 0].T,                  # (Cin, planes)
        "w2": jnp.transpose(w2_oihw, (2, 3, 1, 0)),   # (3, 3, Cin, Cout)  HWIO
        "w3": w3_oihw[:, :, 0, 0].T,                  # (planes, 4*planes)
        "bn1_g": 1.0 + 0.1 * jax.random.normal(ks[3], (in_planes,), jnp.float32),
        "bn1_b": 0.1 * jax.random.normal(ks[4], (in_planes,), jnp.float32),
        "bn2_g": 1.0 + 0.1 * jax.random.normal(ks[5], (planes,), jnp.float32),
        "bn2_b": 0.1 * jax.random.normal(ks[6], (planes,), jnp.float32),
        "bn3_g": 1.0 + 0.1 * jax.random.normal(ks[7], (planes,), jnp.float32),
        "bn3_b": 0.1 * jax.random.normal(ks[8], (planes,), jnp.float32),
    }
    pt_w = {"w1": w1_oihw, "w2": w2_oihw, "w3": w3_oihw}
    if stride != 1 or in_planes != Cout:
        wsc_oihw = 0.1 * jax.random.normal(jax.random.fold_in(key, 99),
                                           (Cout, in_planes, 1, 1), jnp.float32)
        params["wsc"] = wsc_oihw[:, :, 0, 0].T
        pt_w["wsc"] = wsc_oihw
    return params, pt_w


def reference_forward(x, params, pt_w, *, stride, enable_batchnorm=True, eps=1e-5):
    # Pure-JAX NCHW reference mirroring the PyTorch forward (training-mode BN).
    def bn(t, g, b):
        mean = jnp.mean(t, axis=(0, 2, 3), keepdims=True)
        var = jnp.var(t, axis=(0, 2, 3), keepdims=True)
        return (t - mean) * jax.lax.rsqrt(var + eps) * g.reshape(1, -1, 1, 1) \
            + b.reshape(1, -1, 1, 1)

    def conv(t, w, s=1, p=0):
        return jax.lax.conv_general_dilated(
            t, w, (s, s), [(p, p), (p, p)],
            dimension_numbers=("NCHW", "OIHW", "NCHW"))

    out = jax.nn.relu(bn(x, params["bn1_g"], params["bn1_b"])) if enable_batchnorm \
        else jax.nn.relu(x)
    shortcut = conv(out, pt_w["wsc"], stride) if "wsc" in pt_w else x
    out = conv(out, pt_w["w1"])
    out = jax.nn.relu(bn(out, params["bn2_g"], params["bn2_b"])) if enable_batchnorm \
        else jax.nn.relu(out)
    out = conv(out, pt_w["w2"], stride, 1)
    out = jax.nn.relu(bn(out, params["bn3_g"], params["bn3_b"])) if enable_batchnorm \
        else jax.nn.relu(out)
    out = conv(out, pt_w["w3"])
    return out + shortcut


if __name__ == "__main__":
    key = jax.random.PRNGKey(0)
    N, H, W = 2, 16, 16

    # Config A: stride-2 block with projection shortcut (exercises the packed
    # strided 3x3 conv and the strided-row shortcut kernel).  f32 MXU operands
    # for a tight numerical check of the packed-stride logic.
    in_planes, planes, stride = 64, 32, 2
    kx, kp = jax.random.split(key)
    x = jax.random.normal(kx, (N, in_planes, H, W), jnp.float32)  # NCHW, like PyTorch
    params, pt_w = init_params(kp, in_planes, planes, stride)
    out = preact_bottleneck_forward(x, params, stride=stride, mm_dtype=jnp.float32)
    out = jax.block_until_ready(out)
    ref = reference_forward(x, params, pt_w, stride=stride)
    assert out.shape == ref.shape == (N, 4 * planes, H // stride, W // stride), \
        (out.shape, ref.shape)
    np.testing.assert_allclose(np.asarray(out), np.asarray(ref), rtol=5e-3, atol=5e-3)

    # Config B: stride-1 block with identity shortcut, bf16 MXU operands
    # (the perf-recommended fast path; looser tolerance for bf16 rounding).
    in_planes2, planes2, stride2 = 128, 32, 1
    kx2, kp2 = jax.random.split(jax.random.fold_in(key, 1))
    x2 = jax.random.normal(kx2, (N, in_planes2, H, W), jnp.float32)
    params2, pt_w2 = init_params(kp2, in_planes2, planes2, stride2)
    out2 = preact_bottleneck_forward(x2, params2, stride=stride2,
                                     mm_dtype=jnp.bfloat16)
    out2 = jax.block_until_ready(out2)
    ref2 = reference_forward(x2, params2, pt_w2, stride=stride2)
    assert out2.shape == ref2.shape == (N, 4 * planes2, H, W), (out2.shape, ref2.shape)
    np.testing.assert_allclose(np.asarray(out2), np.asarray(ref2), rtol=5e-2, atol=5e-2)

    print("KERNEL_OK")
</pallas_src>

<mosaic_0001>
module attributes {stable_mosaic.version = 11 : i64} {
  func.func @_scale_relu_matmul_kernel(%arg0: i32, %arg1: memref<512x64xf32, #tpu.memory_space<vmem>>, %arg2: memref<1x64xf32, #tpu.memory_space<vmem>>, %arg3: memref<1x64xf32, #tpu.memory_space<vmem>>, %arg4: memref<64x32xf32, #tpu.memory_space<vmem>>, %arg5: memref<512x32xf32, #tpu.memory_space<vmem>>) attributes {dimension_semantics = [#tpu.dimension_semantics<parallel>], iteration_bounds = array<i64: 1>, scalar_prefetch = 0 : i64, scratch_operands = 0 : i64, tpu.core_type = #tpu.core_type<tc>, window_params = [{transform_indices = @transform_0, window_bounds = array<i64: 512, 64>}, {pipeline_mode = #tpu.pipeline_mode<synchronous>, transform_indices = @transform_1, window_bounds = array<i64: 1, 64>}, {pipeline_mode = #tpu.pipeline_mode<synchronous>, transform_indices = @transform_2, window_bounds = array<i64: 1, 64>}, {pipeline_mode = #tpu.pipeline_mode<synchronous>, transform_indices = @transform_3, window_bounds = array<i64: 64, 32>}, {transform_indices = @transform_4, window_bounds = array<i64: 512, 32>}]} {
    %c0 = arith.constant 0 : index
    %c0_0 = arith.constant 0 : index
    %0 = vector.load %arg1[%c0, %c0_0] : memref<512x64xf32, #tpu.memory_space<vmem>>, vector<512x64xf32>
    %c0_1 = arith.constant 0 : index
    %c0_2 = arith.constant 0 : index
    %1 = vector.load %arg2[%c0_1, %c0_2] : memref<1x64xf32, #tpu.memory_space<vmem>>, vector<1x64xf32>
    %2 = vector.broadcast %1 : vector<1x64xf32> to vector<512x64xf32>
    %3 = arith.mulf %0, %2 : vector<512x64xf32>
    %c0_3 = arith.constant 0 : index
    %c0_4 = arith.constant 0 : index
    %4 = vector.load %arg3[%c0_3, %c0_4] : memref<1x64xf32, #tpu.memory_space<vmem>>, vector<1x64xf32>
    %5 = vector.broadcast %4 : vector<1x64xf32> to vector<512x64xf32>
    %6 = arith.addf %3, %5 : vector<512x64xf32>
    %cst = arith.constant 0.000000e+00 : f32
    %7 = vector.broadcast %cst : f32 to vector<512x64xf32>
    %8 = arith.maximumf %6, %7 : vector<512x64xf32>
    %c0_5 = arith.constant 0 : index
    %c0_6 = arith.constant 0 : index
    %9 = vector.load %arg4[%c0_5, %c0_6] : memref<64x32xf32, #tpu.memory_space<vmem>>, vector<64x32xf32>
    %cst_7 = arith.constant dense<0.000000e+00> : vector<512x32xf32>
    %10 = tpu.matmul %8, %9, %cst_7 {dimension_numbers = #tpu.dot_dimension_numbers<[1], [0], [0], [1], [0, 0, 1, 1], [], []>} : vector<512x64xf32>, vector<64x32xf32>, vector<512x32xf32> -> vector<512x32xf32>
    %c0_8 = arith.constant 0 : index
    %c0_9 = arith.constant 0 : index
    %11 = vector.load %arg5[%c0_8, %c0_9] : memref<512x32xf32, #tpu.memory_space<vmem>>, vector<512x32xf32>
    tpu.vector_store %arg5[%c0_8, %c0_9], %10 {strides = array<i32>} : memref<512x32xf32, #tpu.memory_space<vmem>>, vector<512x32xf32>,
    return
  }
  func.func @transform_0(%arg0: i32) -> (i32, i32) {
    %c0_i32 = arith.constant 0 : i32
    %c0_i32_0 = arith.constant 0 : i32
    return %arg0, %c0_i32 : i32, i32
  }
  func.func @transform_1(%arg0: i32) -> (i32, i32) {
    %c0_i32 = arith.constant 0 : i32
    %c0_i32_0 = arith.constant 0 : i32
    %c0_i32_1 = arith.constant 0 : i32
    return %c0_i32, %c0_i32_0 : i32, i32
  }
  func.func @transform_2(%arg0: i32) -> (i32, i32) {
    %c0_i32 = arith.constant 0 : i32
    %c0_i32_0 = arith.constant 0 : i32
    %c0_i32_1 = arith.constant 0 : i32
    return %c0_i32, %c0_i32_0 : i32, i32
  }
  func.func @transform_3(%arg0: i32) -> (i32, i32) {
    %c0_i32 = arith.constant 0 : i32
    %c0_i32_0 = arith.constant 0 : i32
    %c0_i32_1 = arith.constant 0 : i32
    return %c0_i32, %c0_i32_0 : i32, i32
  }
  func.func @transform_4(%arg0: i32) -> (i32, i32) {
    %c0_i32 = arith.constant 0 : i32
    %c0_i32_0 = arith.constant 0 : i32
    return %arg0, %c0_i32 : i32, i32
  }
}

</mosaic_0001>

<bundles_post_ra>
// kernel: tpu_custom_call.1
= control target key start
LH: loop header
LB: loop body
LE: loop exit
PB: predicated region body
PF: predicated region fallthrough
CT: control target
= control target key end

     0   :  { %vm289_vm0 = vcmask 523264   ;;  %vm691_vm1 = vcmask 261120   ;;  %s1549_s3 = inlined_call_operand.vmem [shape: f32[64,32], index: 3, kind: input, shape index: {}]   ;;  %s1550_s0 = inlined_call_operand.vmem [shape: f32[512,64], index: 0, kind: input, shape index: {}]   ;;  %s1551_s1 = inlined_call_operand.vmem [shape: f32[1,64], index: 1, kind: input, shape index: {}]   ;;  %s1552_s2 = inlined_call_operand.vmem [shape: f32[1,64], index: 2, kind: input, shape index: {}]   ;;  %s1553_s4 = inlined_call_operand.vmem [shape: f32[512,32], index: 4, kind: output, shape index: {}]  }
   0x1   :  { %v288_v0 = vld [vmem:[%s1549_s3 + $0x38] sm:$0xff]  ;;  %v287_v1 = vld [vmem:[%s1549_s3 + $0x30] sm:$0xff]  ;;  %v286_v2 = vld [vmem:[%s1549_s3 + $0x28] sm:$0xff] }
   0x2   :  { %825 = vmatpush.msra.mxu2 %v288_v0  ;;  %826 = vmatpush.msra.mxu3 %v288_v0  ;;  %v285_v3 = vld [vmem:[%s1549_s3 + $0x20] sm:$0xff]  ;;  %v284_v12 = vld [vmem:[%s1549_s3 + $0x18] sm:$0xff]  ;;  %v283_v15 = vld [vmem:[%s1549_s3 + $0x10] sm:$0xff] }
   0x3   :  { %490 = vmatpush.msra.mxu0 %v288_v0  ;;  %824 = vmatpush.msra.mxu1 %v288_v0  ;;  %v49_v4 = vld [vmem:[%s1550_s0 + $0x100] sm:$0xff]  ;;  %v50_v18 = vld [vmem:[%s1550_s0 + $0x108] sm:$0xff]  ;;  %v51_v36 = vld [vmem:[%s1550_s0 + $0x110] sm:$0xff] }
   0x4   :  { %828 = vmatpush.msra.mxu2 %v287_v1  ;;  %829 = vmatpush.msra.mxu3 %v287_v1  ;;  %v893_v5 = vld [vmem:[%s1551_s1] ss:$0 sm:$0xff]  ;;  %v66_v19 = vld [vmem:[%s1550_s0 + $0x188] sm:$0xff]  ;;  %v67_v37 = vld [vmem:[%s1550_s0 + $0x190] sm:$0xff] }
   0x5   :  { %491 = vmatpush.msra.mxu0 %v287_v1  ;;  %827 = vmatpush.msra.mxu1 %v287_v1  ;;  %v898_v6 = vld [vmem:[%s1552_s2] ss:$0 sm:$0xff]  ;;  %v117_v9 = vmul.f32 %v893_v5, %v49_v4  ;;  %v282_v20 = vld [vmem:[%s1549_s3 + $0x8] sm:$0xff]  ;;  %v118_v28 = vmul.f32 %v893_v5, %v50_v18  ;;  %v134_v29 = vmul.f32 %v893_v5, %v66_v19  ;;  %v19_v40 = vld [vmem:[%s1550_s0 + $0x10] sm:$0xff] }
   0x6   :  { %v65_v7 = vld [vmem:[%s1550_s0 + $0x180] sm:$0xff]  ;;  %831 = vmatpush.msra.mxu2 %v286_v2  ;;  %832 = vmatpush.msra.mxu3 %v286_v2  ;;  %v18_v23 = vld [vmem:[%s1550_s0 + $0x8] sm:$0xff]  ;;  %v35_v41 = vld [vmem:[%s1550_s0 + $0x90] sm:$0xff]  ;;  %v119_v44 = vmul.f32 %v893_v5, %v51_v36  ;;  %v135_v45 = vmul.f32 %v893_v5, %v67_v37  ;;  %v87_v48 = vmul.f32 %v893_v5, %v19_v40 }
   0x7   :  { %v17_v8 = vld [vmem:[%s1550_s0] sm:$0xff]  ;;  %v133_v10 = vmul.f32 %v893_v5, %v65_v7  ;;  %492 = vmatpush.msra.mxu0 %v286_v2  ;;  %830 = vmatpush.msra.mxu1 %v286_v2  ;;  %v185_v16 = vadd.f32 %v898_v6, %v117_v9  ;;  %v34_v24 = vld [vmem:[%s1550_s0 + $0x88] sm:$0xff]  ;;  %v86_v32 = vmul.f32 %v893_v5, %v18_v23  ;;  %v52_v52 = vld [vmem:[%s1550_s0 + $0x118] sm:$0xff] }
   0x8   :  { %v33_v11 = vld [vmem:[%s1550_s0 + $0x80] sm:$0xff]  ;;  %v85_v13 = vmul.f32 %v893_v5, %v17_v8  ;;  %834 = vmatpush.msra.mxu2 %v285_v3  ;;  %835 = vmatpush.msra.mxu3 %v285_v3  ;;  %v102_v33 = vmul.f32 %v893_v5, %v34_v24  ;;  %v186_v34 = vadd.f32 %v898_v6, %v118_v28  ;;  %v68_v53 = vld [vmem:[%s1550_s0 + $0x198] sm:$0xff]  ;;  %v70_v23 = vld [vmem:[%s1550_s0 + $0x1a8] sm:$0xff] }
   0x9   :  { %v101_v14 = vmul.f32 %v893_v5, %v33_v11  ;;  %493 = vmatpush.msra.mxu0 %v285_v3  ;;  %833 = vmatpush.msra.mxu1 %v285_v3  ;;  %v201_v17 = vadd.f32 %v898_v6, %v133_v10  ;;  %v281_v25 = vld [vmem:[%s1549_s3] sm:$0xff]  ;;  %v249_v26 = vmax.f32 %v185_v16, 0.0  ;;  %v202_v35 = vadd.f32 %v898_v6, %v134_v29  ;;  %v20_v56 = vld [vmem:[%s1550_s0 + $0x18] sm:$0xff] }
   0xa   :  { %837 = vmatpush.msra.mxu2 %v284_v12  ;;  %838 = vmatpush.msra.mxu3 %v284_v12  ;;  %v153_v21 = vadd.f32 %v898_v6, %v85_v13  ;;  %v154_v38 = vadd.f32 %v898_v6, %v86_v32  ;;  %v170_v39 = vadd.f32 %v898_v6, %v102_v33  ;;  %v250_v42 = vmax.f32 %v186_v34, 0.0  ;;  %v36_v57 = vld [vmem:[%s1550_s0 + $0x98] sm:$0xff]  ;;  %v53_v4 = vld [vmem:[%s1550_s0 + $0x120] sm:$0xff] }
   0xb   :  { %494 = vmatpush.msra.mxu0 %v284_v12  ;;  %836 = vmatpush.msra.mxu1 %v284_v12  ;;  %v169_v22 = vadd.f32 %v898_v6, %v101_v14  ;;  %v265_v27 = vmax.f32 %v201_v17, 0.0  ;;  %v266_v43 = vmax.f32 %v202_v35, 0.0  ;;  %v103_v49 = vmul.f32 %v893_v5, %v35_v41  ;;  %v69_v7 = vld [vmem:[%s1550_s0 + $0x1a0] sm:$0xff] }
   0xc   :  { %840 = vmatpush.msra.mxu2 %v283_v15  ;;  %841 = vmatpush.msra.mxu3 %v283_v15  ;;  %v217_v30 = vmax.f32 %v153_v21, 0.0  ;;  %v218_v46 = vmax.f32 %v154_v38, 0.0  ;;  %v234_v47 = vmax.f32 %v170_v39, 0.0  ;;  %v187_v50 = vadd.f32 %v898_v6, %v119_v44  ;;  %v21_v10 = vld [vmem:[%s1550_s0 + $0x20] sm:$0xff]  ;;  %v55_v38 = vld [vmem:[%s1550_s0 + $0x130] sm:$0xff] }
   0xd   :  { %495 = vmatpush.msra.mxu0 %v283_v15  ;;  %839 = vmatpush.msra.mxu1 %v283_v15  ;;  %v233_v31 = vmax.f32 %v169_v22, 0.0  ;;  %v203_v51 = vadd.f32 %v898_v6, %v135_v45  ;;  %v155_v54 = vadd.f32 %v898_v6, %v87_v48  ;;  %v171_v55 = vadd.f32 %v898_v6, %v103_v49  ;;  %v37_v11 = vld [vmem:[%s1550_s0 + $0xa0] sm:$0xff]  ;;  %v54_v22 = vld [vmem:[%s1550_s0 + $0x128] sm:$0xff]  ;;  %v71_v39 = vld [vmem:[%s1550_s0 + $0x1b0] sm:$0xff] }
   0xe   :  { %843 = vmatpush.msra.mxu2 %v282_v20  ;;  %844 = vmatpush.msra.mxu3 %v282_v20  ;;  %v251_v58 = vmax.f32 %v187_v50, 0.0  ;;  %v120_v60 = vmul.f32 %v893_v5, %v52_v52  ;;  %v136_v61 = vmul.f32 %v893_v5, %v68_v53  ;;  %v88_v0 = vmul.f32 %v893_v5, %v20_v56 }
   0xf   :  { %496 = vmatpush.msra.mxu0 %v282_v20  ;;  %842 = vmatpush.msra.mxu1 %v282_v20  ;;  %v267_v59 = vmax.f32 %v203_v51, 0.0  ;;  %v219_v62 = vmax.f32 %v155_v54, 0.0  ;;  %v235_v63 = vmax.f32 %v171_v55, 0.0  ;;  %v104_v1 = vmul.f32 %v893_v5, %v36_v57  ;;  %v56_v54 = vld [vmem:[%s1550_s0 + $0x138] sm:$0xff] }
  0x10   :  { %846 = vmatpush.msra.mxu2 %v281_v25  ;;  %847 = vmatpush.msra.mxu3 %v281_v25  ;;  %v188_v2 = vadd.f32 %v898_v6, %v120_v60  ;;  %v204_v3 = vadd.f32 %v898_v6, %v136_v61  ;;  %v156_v8 = vadd.f32 %v898_v6, %v88_v0  ;;  %v72_v55 = vld [vmem:[%s1550_s0 + $0x1b8] sm:$0xff] }
  0x11   :  { %792 = vmatmul.msk.f32.vlgmr.msra.gmra.mxu2 %vm289_vm0, %v249_v26  ;;  %808 = vmatmul.msk.f32.vlgmr.msra.gmra.mxu3 %vm289_vm0, %v265_v27  ;;  %v172_v9 = vadd.f32 %v898_v6, %v104_v1  ;;  %v121_v14 = vmul.f32 %v893_v5, %v53_v4  ;;  %v137_v15 = vmul.f32 %v893_v5, %v69_v7  ;;  %v22_v26 = vld [vmem:[%s1550_s0 + $0x28] sm:$0xff] }
  0x12   :  { %497 = vmatpush.msra.mxu0 %v281_v25  ;;  %845 = vmatpush.msra.mxu1 %v281_v25  ;;  %v252_v12 = vmax.f32 %v188_v2, 0.0  ;;  %v268_v13 = vmax.f32 %v204_v3, 0.0  ;;  %v220_v16 = vmax.f32 %v156_v8, 0.0  ;;  %v89_v18 = vmul.f32 %v893_v5, %v21_v10  ;;  %v38_v27 = vld [vmem:[%s1550_s0 + $0xa8] sm:$0xff]  ;;  %v57_v8 = vld [vmem:[%s1550_s0 + $0x140] sm:$0xff] }
  0x13   :  { %760 = vmatmul.msk.f32.vlgmr.msra.gmra.mxu0 %vm289_vm0, %v217_v30  ;;  %776 = vmatmul.msk.f32.vlgmr.msra.gmra.mxu1 %vm289_vm0, %v233_v31  ;;  %v236_v17 = vmax.f32 %v172_v9, 0.0  ;;  %v105_v19 = vmul.f32 %v893_v5, %v37_v11  ;;  %v189_v20 = vadd.f32 %v898_v6, %v121_v14  ;;  %v205_v21 = vadd.f32 %v898_v6, %v137_v15  ;;  %v73_v9 = vld [vmem:[%s1550_s0 + $0x1c0] sm:$0xff] }
  0x14   :  { %v157_v24 = vadd.f32 %v898_v6, %v89_v18  ;;  %v122_v30 = vmul.f32 %v893_v5, %v54_v22  ;;  %v138_v31 = vmul.f32 %v893_v5, %v70_v23  ;;  %v90_v34 = vmul.f32 %v893_v5, %v22_v26 }
  0x15   :  { %v173_v25 = vadd.f32 %v898_v6, %v105_v19  ;;  %v253_v28 = vmax.f32 %v189_v20, 0.0  ;;  %v269_v29 = vmax.f32 %v205_v21, 0.0  ;;  %v106_v35 = vmul.f32 %v893_v5, %v38_v27 }
  0x16   :  { %v221_v32 = vmax.f32 %v157_v24, 0.0  ;;  %v190_v36 = vadd.f32 %v898_v6, %v122_v30  ;;  %v206_v37 = vadd.f32 %v898_v6, %v138_v31  ;;  %v158_v40 = vadd.f32 %v898_v6, %v90_v34  ;;  %v58_v24 = vld [vmem:[%s1550_s0 + $0x148] sm:$0xff] }
  0x17   :  { %v237_v33 = vmax.f32 %v173_v25, 0.0  ;;  %v174_v41 = vadd.f32 %v898_v6, %v106_v35  ;;  %v74_v25 = vld [vmem:[%s1550_s0 + $0x1c8] sm:$0xff] }
  0x18   :  { %v254_v44 = vmax.f32 %v190_v36, 0.0  ;;  %v270_v45 = vmax.f32 %v206_v37, 0.0  ;;  %v222_v48 = vmax.f32 %v158_v40, 0.0  ;;  %v59_v40 = vld [vmem:[%s1550_s0 + $0x150] sm:$0xff] }
  0x19   :  { %793 = vmatmul.msk.f32.gmra.mxu2 %vm289_vm0, %v250_v42  ;;  %809 = vmatmul.msk.f32.gmra.mxu3 %vm289_vm0, %v266_v43  ;;  %v23_v42 = vld [vmem:[%s1550_s0 + $0x30] sm:$0xff]  ;;  %v238_v49 = vmax.f32 %v174_v41, 0.0 }
  0x1a   :  { %v39_v43 = vld [vmem:[%s1550_s0 + $0xb0] sm:$0xff]  ;;  %v91_v50 = vmul.f32 %v893_v5, %v23_v42 }
  0x1b   :  { %761 = vmatmul.msk.f32.gmra.mxu0 %vm289_vm0, %v218_v46  ;;  %777 = vmatmul.msk.f32.gmra.mxu1 %vm289_vm0, %v234_v47  ;;  %v123_v46 = vmul.f32 %v893_v5, %v55_v38  ;;  %v139_v47 = vmul.f32 %v893_v5, %v71_v39  ;;  %v107_v51 = vmul.f32 %v893_v5, %v39_v43  ;;  %v75_v41 = vld [vmem:[%s1550_s0 + $0x1d0] sm:$0xff] }
  0x1c   :  { %v159_v56 = vadd.f32 %v898_v6, %v91_v50 }
  0x1d   :  { %v191_v52 = vadd.f32 %v898_v6, %v123_v46  ;;  %v207_v53 = vadd.f32 %v898_v6, %v139_v47  ;;  %v175_v57 = vadd.f32 %v898_v6, %v107_v51 }
  0x1e   :  { %v223_v0 = vmax.f32 %v159_v56, 0.0  ;;  %v60_v56 = vld [vmem:[%s1550_s0 + $0x158] sm:$0xff] }
  0x1f   :  { %v255_v60 = vmax.f32 %v191_v52, 0.0  ;;  %v271_v61 = vmax.f32 %v207_v53, 0.0  ;;  %v239_v1 = vmax.f32 %v175_v57, 0.0  ;;  %v76_v57 = vld [vmem:[%s1550_s0 + $0x1d8] sm:$0xff] }
  0x21   :  { %794 = vmatmul.msk.f32.gmra.mxu2 %vm289_vm0, %v251_v58  ;;  %810 = vmatmul.msk.f32.gmra.mxu3 %vm289_vm0, %v267_v59  ;;  %v24_v58 = vld [vmem:[%s1550_s0 + $0x38] sm:$0xff] }
  0x22   :  { %v40_v59 = vld [vmem:[%s1550_s0 + $0xb8] sm:$0xff]  ;;  %v92_v2 = vmul.f32 %v893_v5, %v24_v58 }
  0x23   :  { %762 = vmatmul.msk.f32.gmra.mxu0 %vm289_vm0, %v219_v62  ;;  %778 = vmatmul.msk.f32.gmra.mxu1 %vm289_vm0, %v235_v63  ;;  %v124_v62 = vmul.f32 %v893_v5, %v56_v54  ;;  %v140_v63 = vmul.f32 %v893_v5, %v72_v55  ;;  %v108_v3 = vmul.f32 %v893_v5, %v40_v59 }
  0x24   :  { %v160_v10 = vadd.f32 %v898_v6, %v92_v2 }
  0x25   :  { %v192_v4 = vadd.f32 %v898_v6, %v124_v62  ;;  %v208_v7 = vadd.f32 %v898_v6, %v140_v63  ;;  %v176_v11 = vadd.f32 %v898_v6, %v108_v3 }
  0x26   :  { %v224_v18 = vmax.f32 %v160_v10, 0.0  ;;  %v61_v10 = vld [vmem:[%s1550_s0 + $0x160] sm:$0xff] }
  0x27   :  { %v256_v14 = vmax.f32 %v192_v4, 0.0  ;;  %v272_v15 = vmax.f32 %v208_v7, 0.0  ;;  %v240_v19 = vmax.f32 %v176_v11, 0.0  ;;  %v77_v11 = vld [vmem:[%s1550_s0 + $0x1e0] sm:$0xff] }
  0x29   :  { %795 = vmatmul.msk.f32.gmra.mxu2 %vm289_vm0, %v252_v12  ;;  %811 = vmatmul.msk.f32.gmra.mxu3 %vm289_vm0, %v268_v13  ;;  %v25_v12 = vld [vmem:[%s1550_s0 + $0x40] sm:$0xff] }
  0x2a   :  { %v41_v13 = vld [vmem:[%s1550_s0 + $0xc0] sm:$0xff]  ;;  %v93_v20 = vmul.f32 %v893_v5, %v25_v12 }
  0x2b   :  { %763 = vmatmul.msk.f32.gmra.mxu0 %vm289_vm0, %v220_v16  ;;  %779 = vmatmul.msk.f32.gmra.mxu1 %vm289_vm0, %v236_v17  ;;  %v125_v16 = vmul.f32 %v893_v5, %v57_v8  ;;  %v141_v17 = vmul.f32 %v893_v5, %v73_v9  ;;  %v109_v21 = vmul.f32 %v893_v5, %v41_v13 }
  0x2c   :  { %v161_v26 = vadd.f32 %v898_v6, %v93_v20 }
  0x2d   :  { %v193_v22 = vadd.f32 %v898_v6, %v125_v16  ;;  %v209_v23 = vadd.f32 %v898_v6, %v141_v17  ;;  %v177_v27 = vadd.f32 %v898_v6, %v109_v21 }
  0x2e   :  { %v225_v34 = vmax.f32 %v161_v26, 0.0  ;;  %v62_v26 = vld [vmem:[%s1550_s0 + $0x168] sm:$0xff] }
  0x2f   :  { %v257_v30 = vmax.f32 %v193_v22, 0.0  ;;  %v273_v31 = vmax.f32 %v209_v23, 0.0  ;;  %v241_v35 = vmax.f32 %v177_v27, 0.0  ;;  %v78_v27 = vld [vmem:[%s1550_s0 + $0x1e8] sm:$0xff] }
  0x31   :  { %796 = vmatmul.msk.f32.gmra.mxu2 %vm289_vm0, %v253_v28  ;;  %812 = vmatmul.msk.f32.gmra.mxu3 %vm289_vm0, %v269_v29  ;;  %v26_v28 = vld [vmem:[%s1550_s0 + $0x48] sm:$0xff] }
  0x32   :  { %v42_v29 = vld [vmem:[%s1550_s0 + $0xc8] sm:$0xff]  ;;  %v94_v36 = vmul.f32 %v893_v5, %v26_v28 }
  0x33   :  { %764 = vmatmul.msk.f32.gmra.mxu0 %vm289_vm0, %v221_v32  ;;  %780 = vmatmul.msk.f32.gmra.mxu1 %vm289_vm0, %v237_v33  ;;  %v126_v32 = vmul.f32 %v893_v5, %v58_v24  ;;  %v142_v33 = vmul.f32 %v893_v5, %v74_v25  ;;  %v110_v37 = vmul.f32 %v893_v5, %v42_v29 }
  0x34   :  { %v162_v42 = vadd.f32 %v898_v6, %v94_v36 }
  0x35   :  { %v194_v38 = vadd.f32 %v898_v6, %v126_v32  ;;  %v210_v39 = vadd.f32 %v898_v6, %v142_v33  ;;  %v178_v43 = vadd.f32 %v898_v6, %v110_v37 }
  0x36   :  { %v226_v50 = vmax.f32 %v162_v42, 0.0  ;;  %v63_v42 = vld [vmem:[%s1550_s0 + $0x170] sm:$0xff] }
  0x37   :  { %v258_v46 = vmax.f32 %v194_v38, 0.0  ;;  %v274_v47 = vmax.f32 %v210_v39, 0.0  ;;  %v242_v51 = vmax.f32 %v178_v43, 0.0  ;;  %v79_v43 = vld [vmem:[%s1550_s0 + $0x1f0] sm:$0xff] }
  0x39   :  { %797 = vmatmul.msk.f32.gmra.mxu2 %vm289_vm0, %v254_v44  ;;  %813 = vmatmul.msk.f32.gmra.mxu3 %vm289_vm0, %v270_v45  ;;  %v27_v44 = vld [vmem:[%s1550_s0 + $0x50] sm:$0xff] }
  0x3a   :  { %v43_v45 = vld [vmem:[%s1550_s0 + $0xd0] sm:$0xff]  ;;  %v95_v52 = vmul.f32 %v893_v5, %v27_v44 }
  0x3b   :  { %765 = vmatmul.msk.f32.gmra.mxu0 %vm289_vm0, %v222_v48  ;;  %781 = vmatmul.msk.f32.gmra.mxu1 %vm289_vm0, %v238_v49  ;;  %v127_v48 = vmul.f32 %v893_v5, %v59_v40  ;;  %v143_v49 = vmul.f32 %v893_v5, %v75_v41  ;;  %v111_v53 = vmul.f32 %v893_v5, %v43_v45 }
  0x3c   :  { %v163_v58 = vadd.f32 %v898_v6, %v95_v52 }
  0x3d   :  { %v195_v54 = vadd.f32 %v898_v6, %v127_v48  ;;  %v211_v55 = vadd.f32 %v898_v6, %v143_v49  ;;  %v179_v59 = vadd.f32 %v898_v6, %v111_v53 }
  0x3e   :  { %v227_v2 = vmax.f32 %v163_v58, 0.0  ;;  %v64_v58 = vld [vmem:[%s1550_s0 + $0x178] sm:$0xff] }
  0x3f   :  { %v259_v62 = vmax.f32 %v195_v54, 0.0  ;;  %v275_v63 = vmax.f32 %v211_v55, 0.0  ;;  %v243_v3 = vmax.f32 %v179_v59, 0.0  ;;  %v80_v59 = vld [vmem:[%s1550_s0 + $0x1f8] sm:$0xff] }
  0x41   :  { %798 = vmatmul.msk.f32.gmra.mxu2 %vm289_vm0, %v255_v60  ;;  %814 = vmatmul.msk.f32.gmra.mxu3 %vm289_vm0, %v271_v61  ;;  %v28_v60 = vld [vmem:[%s1550_s0 + $0x58] sm:$0xff] }
  0x42   :  { %v44_v61 = vld [vmem:[%s1550_s0 + $0xd8] sm:$0xff]  ;;  %v96_v4 = vmul.f32 %v893_v5, %v28_v60 }
  0x43   :  { %766 = vmatmul.msk.f32.gmra.mxu0 %vm289_vm0, %v223_v0  ;;  %782 = vmatmul.msk.f32.gmra.mxu1 %vm289_vm0, %v239_v1  ;;  %v128_v0 = vmul.f32 %v893_v5, %v60_v56  ;;  %v144_v1 = vmul.f32 %v893_v5, %v76_v57  ;;  %v112_v7 = vmul.f32 %v893_v5, %v44_v61 }
  0x44   :  { %v164_v12 = vadd.f32 %v898_v6, %v96_v4 }
  0x45   :  { %v196_v8 = vadd.f32 %v898_v6, %v128_v0  ;;  %v212_v9 = vadd.f32 %v898_v6, %v144_v1  ;;  %v180_v13 = vadd.f32 %v898_v6, %v112_v7 }
  0x46   :  { %v228_v20 = vmax.f32 %v164_v12, 0.0 }
  0x47   :  { %v260_v16 = vmax.f32 %v196_v8, 0.0  ;;  %v276_v17 = vmax.f32 %v212_v9, 0.0  ;;  %v244_v21 = vmax.f32 %v180_v13, 0.0 }
  0x49   :  { %799 = vmatmul.msk.f32.gmra.mxu2 %vm289_vm0, %v256_v14  ;;  %815 = vmatmul.msk.f32.gmra.mxu3 %vm289_vm0, %v272_v15  ;;  %v29_v14 = vld [vmem:[%s1550_s0 + $0x60] sm:$0xff] }
  0x4a   :  { %v45_v15 = vld [vmem:[%s1550_s0 + $0xe0] sm:$0xff]  ;;  %v97_v22 = vmul.f32 %v893_v5, %v29_v14 }
  0x4b   :  { %767 = vmatmul.msk.f32.gmra.mxu0 %vm289_vm0, %v224_v18  ;;  %783 = vmatmul.msk.f32.gmra.mxu1 %vm289_vm0, %v240_v19  ;;  %v129_v18 = vmul.f32 %v893_v5, %v61_v10  ;;  %v145_v19 = vmul.f32 %v893_v5, %v77_v11  ;;  %v113_v23 = vmul.f32 %v893_v5, %v45_v15 }
  0x4c   :  { %v165_v28 = vadd.f32 %v898_v6, %v97_v22 }
  0x4d   :  { %v197_v24 = vadd.f32 %v898_v6, %v129_v18  ;;  %v213_v25 = vadd.f32 %v898_v6, %v145_v19  ;;  %v181_v29 = vadd.f32 %v898_v6, %v113_v23 }
  0x4e   :  { %v229_v36 = vmax.f32 %v165_v28, 0.0 }
  0x4f   :  { %v261_v32 = vmax.f32 %v197_v24, 0.0  ;;  %v277_v33 = vmax.f32 %v213_v25, 0.0  ;;  %v245_v37 = vmax.f32 %v181_v29, 0.0 }
  0x51   :  { %800 = vmatmul.msk.f32.gmra.mxu2 %vm289_vm0, %v257_v30  ;;  %816 = vmatmul.msk.f32.gmra.mxu3 %vm289_vm0, %v273_v31  ;;  %v30_v30 = vld [vmem:[%s1550_s0 + $0x68] sm:$0xff] }
  0x52   :  { %v46_v31 = vld [vmem:[%s1550_s0 + $0xe8] sm:$0xff]  ;;  %v98_v38 = vmul.f32 %v893_v5, %v30_v30 }
  0x53   :  { %768 = vmatmul.msk.f32.gmra.mxu0 %vm289_vm0, %v225_v34  ;;  %784 = vmatmul.msk.f32.gmra.mxu1 %vm289_vm0, %v241_v35  ;;  %v130_v34 = vmul.f32 %v893_v5, %v62_v26  ;;  %v146_v35 = vmul.f32 %v893_v5, %v78_v27  ;;  %v114_v39 = vmul.f32 %v893_v5, %v46_v31 }
  0x54   :  { %v166_v44 = vadd.f32 %v898_v6, %v98_v38 }
  0x55   :  { %v198_v40 = vadd.f32 %v898_v6, %v130_v34  ;;  %v214_v41 = vadd.f32 %v898_v6, %v146_v35  ;;  %v182_v45 = vadd.f32 %v898_v6, %v114_v39 }
  0x56   :  { %v230_v52 = vmax.f32 %v166_v44, 0.0 }
  0x57   :  { %v262_v48 = vmax.f32 %v198_v40, 0.0  ;;  %v278_v49 = vmax.f32 %v214_v41, 0.0  ;;  %v246_v53 = vmax.f32 %v182_v45, 0.0 }
  0x59   :  { %801 = vmatmul.msk.f32.gmra.mxu2 %vm289_vm0, %v258_v46  ;;  %817 = vmatmul.msk.f32.gmra.mxu3 %vm289_vm0, %v274_v47  ;;  %v31_v46 = vld [vmem:[%s1550_s0 + $0x70] sm:$0xff] }
  0x5a   :  { %v47_v47 = vld [vmem:[%s1550_s0 + $0xf0] sm:$0xff]  ;;  %v99_v54 = vmul.f32 %v893_v5, %v31_v46 }
  0x5b   :  { %769 = vmatmul.msk.f32.gmra.mxu0 %vm289_vm0, %v226_v50  ;;  %785 = vmatmul.msk.f32.gmra.mxu1 %vm289_vm0, %v242_v51  ;;  %v131_v50 = vmul.f32 %v893_v5, %v63_v42  ;;  %v147_v51 = vmul.f32 %v893_v5, %v79_v43  ;;  %v115_v55 = vmul.f32 %v893_v5, %v47_v47 }
  0x5c   :  { %v167_v60 = vadd.f32 %v898_v6, %v99_v54 }
  0x5d   :  { %v199_v56 = vadd.f32 %v898_v6, %v131_v50  ;;  %v215_v57 = vadd.f32 %v898_v6, %v147_v51  ;;  %v183_v61 = vadd.f32 %v898_v6, %v115_v55 }
  0x5e   :  { %v231_v4 = vmax.f32 %v167_v60, 0.0 }
  0x5f   :  { %v263_v0 = vmax.f32 %v199_v56, 0.0  ;;  %v279_v1 = vmax.f32 %v215_v57, 0.0  ;;  %v247_v7 = vmax.f32 %v183_v61, 0.0 }
  0x61   :  { %802 = vmatmul.msk.f32.gmra.mxu2 %vm289_vm0, %v259_v62  ;;  %818 = vmatmul.msk.f32.gmra.mxu3 %vm289_vm0, %v275_v63  ;;  %v32_v62 = vld [vmem:[%s1550_s0 + $0x78] sm:$0xff] }
  0x62   :  { %v48_v63 = vld [vmem:[%s1550_s0 + $0xf8] sm:$0xff]  ;;  %v100_v8 = vmul.f32 %v893_v5, %v32_v62 }
  0x63   :  { %770 = vmatmul.msk.f32.gmra.mxu0 %vm289_vm0, %v227_v2  ;;  %786 = vmatmul.msk.f32.gmra.mxu1 %vm289_vm0, %v243_v3  ;;  %v132_v2 = vmul.f32 %v893_v5, %v64_v58  ;;  %v148_v3 = vmul.f32 %v893_v5, %v80_v59  ;;  %v116_v9 = vmul.f32 %v893_v5, %v48_v63 }
  0x64   :  { %v168_v12 = vadd.f32 %v898_v6, %v100_v8 }
  0x65   :  { %v200_v10 = vadd.f32 %v898_v6, %v132_v2  ;;  %v216_v11 = vadd.f32 %v898_v6, %v148_v3  ;;  %v184_v13 = vadd.f32 %v898_v6, %v116_v9 }
  0x67   :  { %v264_v14 = vmax.f32 %v200_v10, 0.0  ;;  %v280_v15 = vmax.f32 %v216_v11, 0.0  ;;  %v248_v5 = vmax.f32 %v184_v13, 0.0 }
  0x69   :  { %803 = vmatmul.msk.f32.gmra.mxu2 %vm289_vm0, %v260_v16  ;;  %819 = vmatmul.msk.f32.gmra.mxu3 %vm289_vm0, %v276_v17  ;;  %v232_v16 = vmax.f32 %v168_v12, 0.0 }
  0x6b   :  { %771 = vmatmul.msk.f32.gmra.mxu0 %vm289_vm0, %v228_v20  ;;  %787 = vmatmul.msk.f32.gmra.mxu1 %vm289_vm0, %v244_v21 }
  0x71   :  { %804 = vmatmul.msk.f32.gmra.mxu2 %vm289_vm0, %v261_v32  ;;  %820 = vmatmul.msk.f32.gmra.mxu3 %vm289_vm0, %v277_v33 }
  0x73   :  { %772 = vmatmul.msk.f32.gmra.mxu0 %vm289_vm0, %v229_v36  ;;  %788 = vmatmul.msk.f32.gmra.mxu1 %vm289_vm0, %v245_v37 }
  0x79   :  { %805 = vmatmul.msk.f32.gmra.mxu2 %vm289_vm0, %v262_v48  ;;  %821 = vmatmul.msk.f32.gmra.mxu3 %vm289_vm0, %v278_v49 }
  0x7b   :  { %773 = vmatmul.msk.f32.gmra.mxu0 %vm289_vm0, %v230_v52  ;;  %789 = vmatmul.msk.f32.gmra.mxu1 %vm289_vm0, %v246_v53 }
  0x81   :  { %806 = vmatmul.msk.f32.gmra.mxu2 %vm289_vm0, %v263_v0  ;;  %822 = vmatmul.msk.f32.gmra.mxu3 %vm289_vm0, %v279_v1 }
  0x83   :  { %774 = vmatmul.msk.f32.gmra.mxu0 %vm289_vm0, %v231_v4  ;;  %790 = vmatmul.msk.f32.gmra.mxu1 %vm289_vm0, %v247_v7 }
  0x89   :  { %807 = vmatmul.msk.f32.gmra.mxu2 %vm289_vm0, %v264_v14  ;;  %823 = vmatmul.msk.f32.gmra.mxu3 %vm289_vm0, %v280_v15 }
  0x8b   :  { %775 = vmatmul.msk.f32.gmra.mxu0 %vm289_vm0, %v232_v16  ;;  %791 = vmatmul.msk.f32.gmra.mxu1 %vm289_vm0, %v248_v5 }
  0x90   :  { %v499_v17 = vpop.f32.mrf.mxu0  ;;  %v547_v18 = vpop.f32.mrf.mxu1 }
  0x91   :  { %692 = vst.msk [vmem:[%s1553_s4] sm:$0xff] %vm691_vm1, %v499_v17 }
  0x92   :  { %708 = vst.msk [vmem:[%s1553_s4 + $0x80] sm:$0xff] %vm691_vm1, %v547_v18 }
  0x94   :  { %v595_v6 = vpop.f32.mrf.mxu2  ;;  %v643_v19 = vpop.f32.mrf.mxu3 }
  0x95   :  { %724 = vst.msk [vmem:[%s1553_s4 + $0x100] sm:$0xff] %vm691_vm1, %v595_v6 }
  0x96   :  { %740 = vst.msk [vmem:[%s1553_s4 + $0x180] sm:$0xff] %vm691_vm1, %v643_v19 }
  0x98   :  { %v502_v20 = vpop.f32.mrf.mxu0  ;;  %v550_v21 = vpop.f32.mrf.mxu1 }
  0x99   :  { %693 = vst.msk [vmem:[%s1553_s4 + $0x8] sm:$0xff] %vm691_vm1, %v502_v20 }
  0x9a   :  { %709 = vst.msk [vmem:[%s1553_s4 + $0x88] sm:$0xff] %vm691_vm1, %v550_v21 }
  0x9c   :  { %v598_v22 = vpop.f32.mrf.mxu2  ;;  %v646_v23 = vpop.f32.mrf.mxu3 }
  0x9d   :  { %725 = vst.msk [vmem:[%s1553_s4 + $0x108] sm:$0xff] %vm691_vm1, %v598_v22 }
  0x9e   :  { %741 = vst.msk [vmem:[%s1553_s4 + $0x188] sm:$0xff] %vm691_vm1, %v646_v23 }
  0xa0   :  { %v505_v24 = vpop.f32.mrf.mxu0  ;;  %v553_v25 = vpop.f32.mrf.mxu1 }
  0xa1   :  { %694 = vst.msk [vmem:[%s1553_s4 + $0x10] sm:$0xff] %vm691_vm1, %v505_v24 }
  0xa2   :  { %710 = vst.msk [vmem:[%s1553_s4 + $0x90] sm:$0xff] %vm691_vm1, %v553_v25 }
  0xa4   :  { %v601_v26 = vpop.f32.mrf.mxu2  ;;  %v649_v27 = vpop.f32.mrf.mxu3 }
  0xa5   :  { %726 = vst.msk [vmem:[%s1553_s4 + $0x110] sm:$0xff] %vm691_vm1, %v601_v26 }
  0xa6   :  { %742 = vst.msk [vmem:[%s1553_s4 + $0x190] sm:$0xff] %vm691_vm1, %v649_v27 }
  0xa8   :  { %v508_v28 = vpop.f32.mrf.mxu0  ;;  %v556_v29 = vpop.f32.mrf.mxu1 }
  0xa9   :  { %695 = vst.msk [vmem:[%s1553_s4 + $0x18] sm:$0xff] %vm691_vm1, %v508_v28 }
  0xaa   :  { %711 = vst.msk [vmem:[%s1553_s4 + $0x98] sm:$0xff] %vm691_vm1, %v556_v29 }
  0xac   :  { %v604_v30 = vpop.f32.mrf.mxu2  ;;  %v652_v31 = vpop.f32.mrf.mxu3 }
  0xad   :  { %727 = vst.msk [vmem:[%s1553_s4 + $0x118] sm:$0xff] %vm691_vm1, %v604_v30 }
  0xae   :  { %743 = vst.msk [vmem:[%s1553_s4 + $0x198] sm:$0xff] %vm691_vm1, %v652_v31 }
  0xb0   :  { %v511_v32 = vpop.f32.mrf.mxu0  ;;  %v559_v33 = vpop.f32.mrf.mxu1 }
  0xb1   :  { %696 = vst.msk [vmem:[%s1553_s4 + $0x20] sm:$0xff] %vm691_vm1, %v511_v32 }
  0xb2   :  { %712 = vst.msk [vmem:[%s1553_s4 + $0xa0] sm:$0xff] %vm691_vm1, %v559_v33 }
  0xb4   :  { %v607_v34 = vpop.f32.mrf.mxu2  ;;  %v655_v35 = vpop.f32.mrf.mxu3 }
  0xb5   :  { %728 = vst.msk [vmem:[%s1553_s4 + $0x120] sm:$0xff] %vm691_vm1, %v607_v34 }
  0xb6   :  { %744 = vst.msk [vmem:[%s1553_s4 + $0x1a0] sm:$0xff] %vm691_vm1, %v655_v35 }
  0xb8   :  { %v514_v36 = vpop.f32.mrf.mxu0  ;;  %v562_v37 = vpop.f32.mrf.mxu1 }
  0xb9   :  { %697 = vst.msk [vmem:[%s1553_s4 + $0x28] sm:$0xff] %vm691_vm1, %v514_v36 }
  0xba   :  { %713 = vst.msk [vmem:[%s1553_s4 + $0xa8] sm:$0xff] %vm691_vm1, %v562_v37 }
  0xbc   :  { %v610_v38 = vpop.f32.mrf.mxu2  ;;  %v658_v39 = vpop.f32.mrf.mxu3 }
  0xbd   :  { %729 = vst.msk [vmem:[%s1553_s4 + $0x128] sm:$0xff] %vm691_vm1, %v610_v38 }
  0xbe   :  { %745 = vst.msk [vmem:[%s1553_s4 + $0x1a8] sm:$0xff] %vm691_vm1, %v658_v39 }
  0xc0   :  { %v517_v40 = vpop.f32.mrf.mxu0  ;;  %v565_v41 = vpop.f32.mrf.mxu1 }
  0xc1   :  { %698 = vst.msk [vmem:[%s1553_s4 + $0x30] sm:$0xff] %vm691_vm1, %v517_v40 }
  0xc2   :  { %714 = vst.msk [vmem:[%s1553_s4 + $0xb0] sm:$0xff] %vm691_vm1, %v565_v41 }
  0xc4   :  { %v613_v42 = vpop.f32.mrf.mxu2  ;;  %v661_v43 = vpop.f32.mrf.mxu3 }
  0xc5   :  { %730 = vst.msk [vmem:[%s1553_s4 + $0x130] sm:$0xff] %vm691_vm1, %v613_v42 }
  0xc6   :  { %746 = vst.msk [vmem:[%s1553_s4 + $0x1b0] sm:$0xff] %vm691_vm1, %v661_v43 }
  0xc8   :  { %v520_v44 = vpop.f32.mrf.mxu0  ;;  %v568_v45 = vpop.f32.mrf.mxu1 }
  0xc9   :  { %699 = vst.msk [vmem:[%s1553_s4 + $0x38] sm:$0xff] %vm691_vm1, %v520_v44 }
  0xca   :  { %715 = vst.msk [vmem:[%s1553_s4 + $0xb8] sm:$0xff] %vm691_vm1, %v568_v45 }
  0xcc   :  { %v616_v46 = vpop.f32.mrf.mxu2  ;;  %v664_v47 = vpop.f32.mrf.mxu3 }
  0xcd   :  { %731 = vst.msk [vmem:[%s1553_s4 + $0x138] sm:$0xff] %vm691_vm1, %v616_v46 }
  0xce   :  { %747 = vst.msk [vmem:[%s1553_s4 + $0x1b8] sm:$0xff] %vm691_vm1, %v664_v47 }
  0xd0   :  { %v523_v48 = vpop.f32.mrf.mxu0  ;;  %v571_v49 = vpop.f32.mrf.mxu1 }
  0xd1   :  { %700 = vst.msk [vmem:[%s1553_s4 + $0x40] sm:$0xff] %vm691_vm1, %v523_v48 }
  0xd2   :  { %716 = vst.msk [vmem:[%s1553_s4 + $0xc0] sm:$0xff] %vm691_vm1, %v571_v49 }
  0xd4   :  { %v619_v50 = vpop.f32.mrf.mxu2  ;;  %v667_v51 = vpop.f32.mrf.mxu3 }
  0xd5   :  { %732 = vst.msk [vmem:[%s1553_s4 + $0x140] sm:$0xff] %vm691_vm1, %v619_v50 }
  0xd6   :  { %748 = vst.msk [vmem:[%s1553_s4 + $0x1c0] sm:$0xff] %vm691_vm1, %v667_v51 }
  0xd8   :  { %v526_v52 = vpop.f32.mrf.mxu0  ;;  %v574_v53 = vpop.f32.mrf.mxu1 }
  0xd9   :  { %701 = vst.msk [vmem:[%s1553_s4 + $0x48] sm:$0xff] %vm691_vm1, %v526_v52 }
  0xda   :  { %717 = vst.msk [vmem:[%s1553_s4 + $0xc8] sm:$0xff] %vm691_vm1, %v574_v53 }
  0xdc   :  { %v622_v54 = vpop.f32.mrf.mxu2  ;;  %v670_v55 = vpop.f32.mrf.mxu3 }
  0xdd   :  { %733 = vst.msk [vmem:[%s1553_s4 + $0x148] sm:$0xff] %vm691_vm1, %v622_v54 }
  0xde   :  { %749 = vst.msk [vmem:[%s1553_s4 + $0x1c8] sm:$0xff] %vm691_vm1, %v670_v55 }
  0xe0   :  { %v529_v56 = vpop.f32.mrf.mxu0  ;;  %v577_v57 = vpop.f32.mrf.mxu1 }
  0xe1   :  { %702 = vst.msk [vmem:[%s1553_s4 + $0x50] sm:$0xff] %vm691_vm1, %v529_v56 }
  0xe2   :  { %718 = vst.msk [vmem:[%s1553_s4 + $0xd0] sm:$0xff] %vm691_vm1, %v577_v57 }
  0xe4   :  { %v625_v58 = vpop.f32.mrf.mxu2  ;;  %v673_v59 = vpop.f32.mrf.mxu3 }
  0xe5   :  { %734 = vst.msk [vmem:[%s1553_s4 + $0x150] sm:$0xff] %vm691_vm1, %v625_v58 }
  0xe6   :  { %750 = vst.msk [vmem:[%s1553_s4 + $0x1d0] sm:$0xff] %vm691_vm1, %v673_v59 }
  0xe8   :  { %v532_v60 = vpop.f32.mrf.mxu0  ;;  %v580_v61 = vpop.f32.mrf.mxu1 }
  0xe9   :  { %703 = vst.msk [vmem:[%s1553_s4 + $0x58] sm:$0xff] %vm691_vm1, %v532_v60 }
  0xea   :  { %719 = vst.msk [vmem:[%s1553_s4 + $0xd8] sm:$0xff] %vm691_vm1, %v580_v61 }
  0xec   :  { %v628_v62 = vpop.f32.mrf.mxu2  ;;  %v676_v63 = vpop.f32.mrf.mxu3 }
  0xed   :  { %735 = vst.msk [vmem:[%s1553_s4 + $0x158] sm:$0xff] %vm691_vm1, %v628_v62 }
  0xee   :  { %751 = vst.msk [vmem:[%s1553_s4 + $0x1d8] sm:$0xff] %vm691_vm1, %v676_v63 }
  0xf0   :  { %v535_v0 = vpop.f32.mrf.mxu0  ;;  %v583_v1 = vpop.f32.mrf.mxu1 }
  0xf1   :  { %704 = vst.msk [vmem:[%s1553_s4 + $0x60] sm:$0xff] %vm691_vm1, %v535_v0 }
  0xf2   :  { %720 = vst.msk [vmem:[%s1553_s4 + $0xe0] sm:$0xff] %vm691_vm1, %v583_v1 }
  0xf4   :  { %v631_v2 = vpop.f32.mrf.mxu2  ;;  %v679_v3 = vpop.f32.mrf.mxu3 }
  0xf5   :  { %736 = vst.msk [vmem:[%s1553_s4 + $0x160] sm:$0xff] %vm691_vm1, %v631_v2 }
  0xf6   :  { %752 = vst.msk [vmem:[%s1553_s4 + $0x1e0] sm:$0xff] %vm691_vm1, %v679_v3 }
  0xf8   :  { %v538_v4 = vpop.f32.mrf.mxu0  ;;  %v586_v7 = vpop.f32.mrf.mxu1 }
  0xf9   :  { %705 = vst.msk [vmem:[%s1553_s4 + $0x68] sm:$0xff] %vm691_vm1, %v538_v4 }
  0xfa   :  { %721 = vst.msk [vmem:[%s1553_s4 + $0xe8] sm:$0xff] %vm691_vm1, %v586_v7 }
  0xfc   :  { %v634_v8 = vpop.f32.mrf.mxu2  ;;  %v682_v9 = vpop.f32.mrf.mxu3 }
  0xfd   :  { %737 = vst.msk [vmem:[%s1553_s4 + $0x168] sm:$0xff] %vm691_vm1, %v634_v8 }
  0xfe   :  { %753 = vst.msk [vmem:[%s1553_s4 + $0x1e8] sm:$0xff] %vm691_vm1, %v682_v9 }
 0x100   :  { %v541_v10 = vpop.f32.mrf.mxu0  ;;  %v589_v11 = vpop.f32.mrf.mxu1 }
 0x101   :  { %706 = vst.msk [vmem:[%s1553_s4 + $0x70] sm:$0xff] %vm691_vm1, %v541_v10 }
 0x102   :  { %722 = vst.msk [vmem:[%s1553_s4 + $0xf0] sm:$0xff] %vm691_vm1, %v589_v11 }
 0x104   :  { %v637_v12 = vpop.f32.mrf.mxu2  ;;  %v685_v13 = vpop.f32.mrf.mxu3 }
 0x105   :  { %738 = vst.msk [vmem:[%s1553_s4 + $0x170] sm:$0xff] %vm691_vm1, %v637_v12 }
 0x106   :  { %754 = vst.msk [vmem:[%s1553_s4 + $0x1f0] sm:$0xff] %vm691_vm1, %v685_v13 }
 0x108   :  { %v544_v14 = vpop.f32.mrf.mxu0  ;;  %v592_v15 = vpop.f32.mrf.mxu1 }
 0x109   :  { %707 = vst.msk [vmem:[%s1553_s4 + $0x78] sm:$0xff] %vm691_vm1, %v544_v14 }
 0x10a   :  { %723 = vst.msk [vmem:[%s1553_s4 + $0xf8] sm:$0xff] %vm691_vm1, %v592_v15 }
 0x10c   :  { %v640_v16 = vpop.f32.mrf.mxu2  ;;  %v688_v5 = vpop.f32.mrf.mxu3 }
 0x10d   :  { %739 = vst.msk [vmem:[%s1553_s4 + $0x178] sm:$0xff] %vm691_vm1, %v640_v16 }
 0x10e   :  { %755 = vst.msk [vmem:[%s1553_s4 + $0x1f8] sm:$0xff] %vm691_vm1, %v688_v5 }

</bundles_post_ra>
